<compile_context>
chip_gen: v7x
topology: tpu7x:2x2x1
jax: 0.10.0
libtpu: 0.0.40
codegen_flags: <defaults>
</compile_context>

<pallas_src>
import functools

import jax
import jax.numpy as jnp
from jax import lax
from jax.experimental import pallas as pl
from jax.experimental.pallas import tpu as pltpu


# ---------------------------------------------------------------------------
# Small helpers
# ---------------------------------------------------------------------------
def _pick_tile(n, cap, multiple):
    """Largest t <= cap with n % t == 0 and t % multiple == 0 (fallback: n)."""
    if n <= cap:
        return n
    t = cap - cap % multiple
    while t >= multiple:
        if n % t == 0:
            return t
        t -= multiple
    return n


def _mosaic_params(semantics, vmem_est_bytes):
    """Dimension semantics + explicit scoped-VMEM limit when needed (v6e item)."""
    vmem_limit = None
    if vmem_est_bytes > 32 * 1024 * 1024:           # above the default scoped limit
        vmem_limit = min(int(vmem_est_bytes * 5 // 4), 128 * 1024 * 1024)
    return pltpu.CompilerParams(dimension_semantics=semantics,
                                vmem_limit_bytes=vmem_limit)


def _sigmoid(x):
    # Explicit exp-based sigmoid: EUP exp + reciprocal; identical formula is
    # used in the reference so the correctness check stays tight with bf16.
    return 1.0 / (1.0 + jnp.exp(-x))


# ---------------------------------------------------------------------------
# Kernel 1: hoisted input projection  gates_x = x @ W_ih + b   (parallel)
# ---------------------------------------------------------------------------
def _in_proj_kernel(x_ref, wih_ref, b_ref, gx_ref):
    gx_ref[...] = (
        jnp.dot(x_ref[...], wih_ref[...], preferred_element_type=jnp.float32)
        + b_ref[...])


def in_projection(x_bf16, w_ih_bf16, b, *, max_rows=512):
    """x_bf16: (T*B, E) bf16.  Returns gates_x (T*B, 4H) f32."""
    TB, E = x_bf16.shape
    G = w_ih_bf16.shape[1]
    rc = _pick_tile(TB, max_rows, 8)
    est = 2 * (rc * E * 2 + E * G * 2 + G * 4 + rc * G * 4)
    return pl.pallas_call(
        _in_proj_kernel,
        out_shape=jax.ShapeDtypeStruct((TB, G), jnp.float32),
        grid_spec=pltpu.PrefetchScalarGridSpec(
            num_scalar_prefetch=0,
            grid=(TB // rc,),
            in_specs=[
                pl.BlockSpec((rc, E), lambda i: (i, 0)),        # x row chunk
                pl.BlockSpec((E, G), lambda i: (0, 0)),         # W_ih (bf16)
                pl.BlockSpec((1, G), lambda i: (0, 0)),         # combined bias
            ],
            out_specs=pl.BlockSpec((rc, G), lambda i: (i, 0)),  # gates_x chunk
        ),
        compiler_params=_mosaic_params(("parallel",), est),
    )(x_bf16, w_ih_bf16, b)


# ---------------------------------------------------------------------------
# Kernel 2: LSTM recurrence over time chunks (serial grid, carry in scratch)
# ---------------------------------------------------------------------------
def _lstm_chunk_kernel(gx_ref, whh_ref, h_all_ref, h_sc, c_sc,
                       *, steps, batch, hidden):
    B, H = batch, hidden

    @pl.when(pl.program_id(0) == 0)
    def _():
        h_sc[...] = jnp.zeros_like(h_sc)
        c_sc[...] = jnp.zeros_like(c_sc)

    def step(t, carry):
        h, c = carry
        row = pl.multiple_of(t * B, B)               # sublane-aligned (B multiple of 8)
        gx = gx_ref[pl.ds(row, B), :]                # (B, 4H) f32, precomputed
        # bf16 operands, f32 accumulation; W_hh read from VMEM ref each step
        # (never held as a 64-vreg f32 value).
        gates = gx + jnp.dot(h.astype(jnp.bfloat16), whh_ref[...],
                             preferred_element_type=jnp.float32)

        # Gate order i, f, g, o (PyTorch).  H multiple of 128 -> lane-aligned.
        i = _sigmoid(gates[:, 0 * H:1 * H])
        f = _sigmoid(gates[:, 1 * H:2 * H])
        g = jnp.tanh(gates[:, 2 * H:3 * H])
        o = _sigmoid(gates[:, 3 * H:4 * H])

        c = f * c + i * g                            # cell state kept in f32
        h = o * jnp.tanh(c)

        h_all_ref[pl.ds(row, B), :] = h.astype(h_all_ref.dtype)
        return (h, c)

    unroll = True if steps <= 32 else 8              # partial unroll for long chunks
    h, c = lax.fori_loop(0, steps, step, (h_sc[...], c_sc[...]), unroll=unroll)
    h_sc[...] = h
    c_sc[...] = c


def lstm_recurrence(gates_x, w_hh_bf16, *, seq_len, batch, hidden, max_chunk=64):
    """gates_x: (T*B, 4H) f32 precomputed x-projection.  Returns h_all (T*B, H) f32."""
    TB, G = gates_x.shape
    H = hidden
    tc = _pick_tile(seq_len, max_chunk, 1)
    kernel = functools.partial(_lstm_chunk_kernel, steps=tc, batch=batch, hidden=H)
    est = (2 * tc * batch * G * 4        # gates chunk, double-buffered
           + 2 * H * G * 2               # W_hh (bf16)
           + 2 * tc * batch * H * 4      # h_all output chunk
           + 2 * batch * H * 4)          # h/c scratch
    return pl.pallas_call(
        kernel,
        out_shape=jax.ShapeDtypeStruct((TB, H), jnp.float32),
        grid_spec=pltpu.PrefetchScalarGridSpec(
            num_scalar_prefetch=0,
            grid=(seq_len // tc,),
            in_specs=[
                pl.BlockSpec((tc * batch, G), lambda i: (i, 0)),   # gates chunk
                pl.BlockSpec((H, G), lambda i: (0, 0)),            # W_hh (bf16)
            ],
            out_specs=pl.BlockSpec((tc * batch, H), lambda i: (i, 0)),
            scratch_shapes=[
                pltpu.VMEM((batch, H), jnp.float32),               # h carry
                pltpu.VMEM((batch, H), jnp.float32),               # c carry
            ],
        ),
        compiler_params=_mosaic_params(("arbitrary",), est),       # serial recurrence
    )(gates_x, w_hh_bf16)


# ---------------------------------------------------------------------------
# Kernel 3: FC projection, fully parallel over rows x vocab tiles
# ---------------------------------------------------------------------------
def _fc_kernel(h_ref, wfc_ref, bfc_ref, out_ref):
    out_ref[...] = (
        jnp.dot(h_ref[...], wfc_ref[...], preferred_element_type=jnp.float32)
        + bfc_ref[...]).astype(out_ref.dtype)


def fc_project(h_bm_bf16, w_fc_bf16, b_fc, *, max_tile_v=1024, max_rows=256):
    """h_bm_bf16: (B*T, H) bf16 batch-major.  Returns logits (B*T, V) f32."""
    R, H = h_bm_bf16.shape
    V = w_fc_bf16.shape[1]
    tile_v = _pick_tile(V, max_tile_v, 128) if V % 128 == 0 else V
    rr = _pick_tile(R, max_rows, 8)
    est = 2 * (rr * H * 2 + H * tile_v * 2 + tile_v * 4 + rr * tile_v * 4)
    return pl.pallas_call(
        _fc_kernel,
        out_shape=jax.ShapeDtypeStruct((R, V), jnp.float32),
        grid_spec=pltpu.PrefetchScalarGridSpec(
            num_scalar_prefetch=0,
            grid=(R // rr, V // tile_v),
            in_specs=[
                pl.BlockSpec((rr, H), lambda i, j: (i, 0)),        # h rows (bf16)
                pl.BlockSpec((H, tile_v), lambda i, j: (0, j)),    # W_fc tile (bf16)
                pl.BlockSpec((1, tile_v), lambda i, j: (0, j)),    # b_fc tile
            ],
            out_specs=pl.BlockSpec((rr, tile_v), lambda i, j: (i, j)),
        ),
        compiler_params=_mosaic_params(("parallel", "parallel"), est),
    )(h_bm_bf16, w_fc_bf16, b_fc)


# ---------------------------------------------------------------------------
# Parameters + wrapper (matches nn.Embedding / nn.LSTM / nn.Linear shapes).
# ---------------------------------------------------------------------------
class DecoderRNNParams:
    def __init__(self, key, embed_size, hidden_size, vocab_size):
        self.embed_size = embed_size
        self.hidden_size = hidden_size
        self.vocab_size = vocab_size
        k = jax.random.split(key, 7)
        s = 0.1
        # nn.Embedding(vocab_size, embed_size)
        self.embedding = s * jax.random.normal(k[0], (vocab_size, embed_size), jnp.float32)
        # nn.LSTM weights (stored transposed for x @ W), gate order i,f,g,o
        self.w_ih = s * jax.random.normal(k[1], (embed_size, 4 * hidden_size), jnp.float32)
        self.w_hh = s * jax.random.normal(k[2], (hidden_size, 4 * hidden_size), jnp.float32)
        b_ih = s * jax.random.normal(k[3], (4 * hidden_size,), jnp.float32)
        b_hh = s * jax.random.normal(k[4], (4 * hidden_size,), jnp.float32)
        self.b = (b_ih + b_hh).reshape(1, 4 * hidden_size)
        # nn.Linear(hidden_size, vocab_size) (stored transposed)
        self.w_fc = s * jax.random.normal(k[5], (hidden_size, vocab_size), jnp.float32)
        self.b_fc = s * jax.random.normal(k[6], (1, vocab_size), jnp.float32)


def decoder_forward(params, features, captions):
    """features: (B, E) float32, captions: (B, S) int32.  Returns (B, S, V)."""
    B = features.shape[0]
    H = params.hidden_size
    # Embedding gather + feature concat (plain-JAX glue, not the hot path).
    emb = jnp.take(params.embedding, captions[:, :-1], axis=0)        # (B, S-1, E)
    inputs = jnp.concatenate([features[:, None, :], emb], axis=1)     # (B, T, E)
    T, E = inputs.shape[1], inputs.shape[2]
    x_flat = jnp.transpose(inputs, (1, 0, 2)).reshape(T * B, E)       # (T*B, E) time-major

    # bf16 matmul operands (f32 accumulation inside the kernels).
    w_ih = params.w_ih.astype(jnp.bfloat16)
    w_hh = params.w_hh.astype(jnp.bfloat16)
    w_fc = params.w_fc.astype(jnp.bfloat16)

    gates_x = in_projection(x_flat.astype(jnp.bfloat16), w_ih, params.b)      # (T*B, 4H) f32
    h_all = lstm_recurrence(gates_x, w_hh, seq_len=T, batch=B, hidden=H)      # (T*B, H)  f32

    # Tiny relayout to batch-major (T*B*H bf16 bytes) so the big logits tensor
    # is produced directly in (B, T, V) layout — no trailing logits transpose.
    h_bm = jnp.transpose(h_all.reshape(T, B, H), (1, 0, 2)) \
              .reshape(B * T, H).astype(jnp.bfloat16)

    logits = fc_project(h_bm, w_fc, params.b_fc)                              # (B*T, V) f32
    return logits.reshape(B, T, -1)                                           # (B, T, V)


def _reference_forward(params, features, captions):
    """Pure-JAX reference (lax.scan LSTM) with matched bf16-operand precision."""
    bf16 = jnp.bfloat16
    emb = jnp.take(params.embedding, captions[:, :-1], axis=0)
    inputs = jnp.concatenate([features[:, None, :], emb], axis=1)
    x_tbe = jnp.transpose(inputs, (1, 0, 2))
    B = features.shape[0]
    H = params.hidden_size
    w_ih = params.w_ih.astype(bf16)
    w_hh = params.w_hh.astype(bf16)
    w_fc = params.w_fc.astype(bf16)

    def step(carry, x):
        h, c = carry
        gx = jnp.dot(x.astype(bf16), w_ih, preferred_element_type=jnp.float32) + params.b
        gates = gx + jnp.dot(h.astype(bf16), w_hh, preferred_element_type=jnp.float32)
        i = _sigmoid(gates[:, 0 * H:1 * H])
        f = _sigmoid(gates[:, 1 * H:2 * H])
        g = jnp.tanh(gates[:, 2 * H:3 * H])
        o = _sigmoid(gates[:, 3 * H:4 * H])
        c = f * c + i * g
        h = o * jnp.tanh(c)
        out = jnp.dot(h.astype(bf16), w_fc,
                      preferred_element_type=jnp.float32) + params.b_fc
        return (h, c), out

    init = (jnp.zeros((B, H), jnp.float32), jnp.zeros((B, H), jnp.float32))
    _, out = jax.lax.scan(step, init, x_tbe)
    return jnp.transpose(out, (1, 0, 2))


if __name__ == "__main__":
    # Small but lane-friendly shapes: H=128 puts gate slices on 128-lane
    # boundaries, B=8 matches the sublane count, V a multiple of 128.
    embed_size, hidden_size, vocab_size = 64, 128, 1024
    batch, seq_len = 8, 10

    key = jax.random.PRNGKey(0)
    kp, kf, kc = jax.random.split(key, 3)

    params = DecoderRNNParams(kp, embed_size, hidden_size, vocab_size)
    features = jax.random.normal(kf, (batch, embed_size), jnp.float32)
    captions = jax.random.randint(kc, (batch, seq_len), 0, vocab_size, jnp.int32)

    out = jax.block_until_ready(decoder_forward(params, features, captions))
    ref = jax.block_until_ready(_reference_forward(params, features, captions))

    assert out.shape == (batch, seq_len, vocab_size), out.shape
    max_err = float(jnp.max(jnp.abs(out - ref)))
    assert jnp.allclose(out, ref, atol=5e-3, rtol=5e-3), max_err

    print("KERNEL_OK")
</pallas_src>

<mosaic_0001>
module attributes {stable_mosaic.version = 11 : i64} {
  func.func @_in_proj_kernel(%arg0: i32, %arg1: memref<80x64xbf16, #tpu.memory_space<vmem>>, %arg2: memref<64x512xbf16, #tpu.memory_space<vmem>>, %arg3: memref<1x512xf32, #tpu.memory_space<vmem>>, %arg4: memref<80x512xf32, #tpu.memory_space<vmem>>) attributes {dimension_semantics = [#tpu.dimension_semantics<parallel>], iteration_bounds = array<i64: 1>, scalar_prefetch = 0 : i64, scratch_operands = 0 : i64, tpu.core_type = #tpu.core_type<tc>, window_params = [{transform_indices = @transform_0, window_bounds = array<i64: 80, 64>}, {pipeline_mode = #tpu.pipeline_mode<synchronous>, transform_indices = @transform_1, window_bounds = array<i64: 64, 512>}, {pipeline_mode = #tpu.pipeline_mode<synchronous>, transform_indices = @transform_2, window_bounds = array<i64: 1, 512>}, {transform_indices = @transform_3, window_bounds = array<i64: 80, 512>}]} {
    %c0 = arith.constant 0 : index
    %c0_0 = arith.constant 0 : index
    %0 = vector.load %arg1[%c0, %c0_0] : memref<80x64xbf16, #tpu.memory_space<vmem>>, vector<80x64xbf16>
    %c0_1 = arith.constant 0 : index
    %c0_2 = arith.constant 0 : index
    %1 = vector.load %arg2[%c0_1, %c0_2] : memref<64x512xbf16, #tpu.memory_space<vmem>>, vector<64x512xbf16>
    %cst = arith.constant dense<0.000000e+00> : vector<80x512xf32>
    %2 = tpu.matmul %0, %1, %cst {dimension_numbers = #tpu.dot_dimension_numbers<[1], [0], [0], [1], [0, 0, 1, 1], [], []>} : vector<80x64xbf16>, vector<64x512xbf16>, vector<80x512xf32> -> vector<80x512xf32>
    %c0_3 = arith.constant 0 : index
    %c0_4 = arith.constant 0 : index
    %3 = vector.load %arg3[%c0_3, %c0_4] : memref<1x512xf32, #tpu.memory_space<vmem>>, vector<1x512xf32>
    %4 = vector.broadcast %3 : vector<1x512xf32> to vector<80x512xf32>
    %5 = arith.addf %2, %4 : vector<80x512xf32>
    %c0_5 = arith.constant 0 : index
    %c0_6 = arith.constant 0 : index
    %6 = vector.load %arg4[%c0_5, %c0_6] : memref<80x512xf32, #tpu.memory_space<vmem>>, vector<80x512xf32>
    tpu.vector_store %arg4[%c0_5, %c0_6], %5 {strides = array<i32>} : memref<80x512xf32, #tpu.memory_space<vmem>>, vector<80x512xf32>,
    return
  }
  func.func @transform_0(%arg0: i32) -> (i32, i32) {
    %c0_i32 = arith.constant 0 : i32
    %c0_i32_0 = arith.constant 0 : i32
    return %arg0, %c0_i32 : i32, i32
  }
  func.func @transform_1(%arg0: i32) -> (i32, i32) {
    %c0_i32 = arith.constant 0 : i32
    %c0_i32_0 = arith.constant 0 : i32
    %c0_i32_1 = arith.constant 0 : i32
    return %c0_i32, %c0_i32_0 : i32, i32
  }
  func.func @transform_2(%arg0: i32) -> (i32, i32) {
    %c0_i32 = arith.constant 0 : i32
    %c0_i32_0 = arith.constant 0 : i32
    %c0_i32_1 = arith.constant 0 : i32
    return %c0_i32, %c0_i32_0 : i32, i32
  }
  func.func @transform_3(%arg0: i32) -> (i32, i32) {
    %c0_i32 = arith.constant 0 : i32
    %c0_i32_0 = arith.constant 0 : i32
    return %arg0, %c0_i32 : i32, i32
  }
}

</mosaic_0001>

<bundles_post_ra>
// kernel: tpu_custom_call.1
= control target key start
LH: loop header
LB: loop body
LE: loop exit
PB: predicated region body
PF: predicated region fallthrough
CT: control target
= control target key end

     0   :  { %8 = vsyncpa [#allocation3], 0  ;;  %s664_s0 = inlined_call_operand.vmem [shape: bf16[80,64], index: 0, kind: input, shape index: {}]   ;;  %s665_s1 = inlined_call_operand.hbm [shape: bf16[64,512], index: 1, kind: input, shape index: {}]   ;;  %s666_s2 = inlined_call_operand.vmem [shape: f32[1,512], index: 2, kind: input, shape index: {}]   ;;  %s667_s3 = inlined_call_operand.hbm [shape: f32[80,512], index: 3, kind: output, shape index: {}]  }
   0x1   :  { %9 = vsyncpa [#allocation4], 0  ;;  %s537_s12 = smov [#allocation2]   ;;  %s489_s16 = scalar_lea.hbm %s665_s1, 2048 }
   0x2   :  { %s17_s13 = sshll.u32 %s537_s12, 4  ;;  %p490_p0 = scmp.ne.s32.totalorder %s665_s1, %s489_s16  ;;  %s18_s13 = int_to_ptr.vmem [resolvable:$true] %s17_s13 }
   0x3   :  { %p493_p1 = scmp.lt.u32.totalorder %s489_s16, %s665_s1 }
   0x5   :  { %p495_p2 = pnand %p493_p1, %p490_p0 }
   0x7   :  { %498 = shalt.err (!%p495_p2)
}
   0x8   :  { %s499_s21 = scalar_lea.vmem %s18_s13, 2048  ;;  %p504_p4 = scmp.lt.s32.totalorder %s18_s13, %s18_s13 }
   0x9   :  { %p500_p3 = scmp.ne.s32.totalorder %s18_s13, %s499_s21  ;;  %p505_p5 = scmp.lt.s32.totalorder %s499_s21, %s499_s21 }
   0xb   :  { %p506_p6 = por %p505_p5, %p504_p4 }
   0xd   :  { %p507_p7 = pnand %p506_p6, %p500_p3 }
   0xf   :  { %510 = shalt.err (!%p507_p7)
}
  0x10   :  { %s538_s22 = smov 256   ;;  %s539_s23 = smov 16  }
  0x11   :  { %23 = dma.hbm_to_vmem [thread:$0]  %s665_s1, 2048, %s18_s13, [#allocation3], %s538_s22, %s538_s22, %s539_s23  }
  0x12   :  { %533 = dma.done.wait [#allocation3], 2048  }
  0x13   :  { %534 = vsyncadd [#allocation3], 4294965248  ;;  %v540_v0 = vmov 0   ;;  %v460_v1 = vld [vmem:[#allocation2 + $0x4] ss:$16 sps:$4 sm:$0xff]   ;;  %v484_v17 = vld [vmem:[%s664_s0] sm:$0xff]   ;;  %v58_v22 = vlaneseq }
  0x14   :  { %231 = vmatprep.mubr.bf16.mxu0 %v540_v0  ;;  %314 = vmatprep.mubr.bf16.mxu1 %v540_v0  ;;  %v462_v2 = vld [vmem:[#allocation2 + $0xc] ss:$16 sps:$4 sm:$0xff]   ;;  %v464_v3 = vld [vmem:[#allocation2] ss:$16 sps:$4 sm:$0xff]   ;;  %v465_v4 = vld [vmem:[#allocation2 + $0x8] ss:$16 sps:$4 sm:$0xff]  }
  0x15   :  { %199 = vmatprep.subr.bf16.mxu0 %v460_v1  ;;  %282 = vmatprep.subr.bf16.mxu1 %v462_v2  ;;  %v466_v5 = vld [vmem:[#allocation2 + $0x24] ss:$16 sps:$4 sm:$0xff]   ;;  %v468_v6 = vld [vmem:[#allocation2 + $0x2c] ss:$16 sps:$4 sm:$0xff]   ;;  %v470_v7 = vld [vmem:[#allocation2 + $0x20] ss:$16 sps:$4 sm:$0xff]  }
  0x16   :  { %200 = vmatpush1.bf16.msra.mxu0 %v464_v3  ;;  %283 = vmatpush1.bf16.msra.mxu1 %v465_v4  ;;  %v471_v8 = vld [vmem:[#allocation2 + $0x28] ss:$16 sps:$4 sm:$0xff]   ;;  %v472_v9 = vld [vmem:[#allocation2 + $0x44] ss:$16 sps:$4 sm:$0xff]   ;;  %v474_v10 = vld [vmem:[#allocation2 + $0x4c] ss:$16 sps:$4 sm:$0xff]  }
  0x17   :  { %201 = vmatprep.subr.bf16.mxu0 %v466_v5  ;;  %284 = vmatprep.subr.bf16.mxu1 %v468_v6  ;;  %v476_v11 = vld [vmem:[#allocation2 + $0x40] ss:$16 sps:$4 sm:$0xff]   ;;  %v477_v12 = vld [vmem:[#allocation2 + $0x48] ss:$16 sps:$4 sm:$0xff]   ;;  %v478_v13 = vld [vmem:[#allocation2 + $0x64] ss:$16 sps:$4 sm:$0xff]  }
  0x18   :  { %v480_v14 = vld [vmem:[#allocation2 + $0x6c] ss:$16 sps:$4 sm:$0xff]   ;;  %v482_v15 = vld [vmem:[#allocation2 + $0x60] ss:$16 sps:$4 sm:$0xff]   ;;  %v483_v16 = vld [vmem:[#allocation2 + $0x68] ss:$16 sps:$4 sm:$0xff]  }
  0x19   :  { %vm183_vm0 = vcmask 523264   ;;  %v485_v18 = vld [vmem:[%s664_s0 + $0x8] sm:$0xff]   ;;  %v486_v19 = vld [vmem:[%s664_s0 + $0x10] sm:$0xff]   ;;  %v487_v20 = vld [vmem:[%s664_s0 + $0x18] sm:$0xff]   ;;  %v59_v23 = vshrl.u32 %v58_v22, 7 }
  0x1a   :  { %202 = vmatpush1.bf16.msra.mxu0 %v470_v7  ;;  %285 = vmatpush1.bf16.msra.mxu1 %v471_v8  ;;  %v488_v21 = vld [vmem:[%s664_s0 + $0x20] sm:$0xff]   ;;  %s541_s0 = smov [#allocation5]  }
  0x1b   :  { %203 = vmatprep.subr.bf16.mxu0 %v472_v9  ;;  %286 = vmatprep.subr.bf16.mxu1 %v474_v10  ;;  %v60_v24 = vsub.s32 0, %v59_v23  ;;  %v68_v25 = vsub.s32 2, %v59_v23  ;;  %v56_v26 = vld [vmem:[%s666_s2] sm:$0xf]  ;;  %v64_v27 = vsub.s32 1, %v59_v23  ;;  %v72_v28 = vsub.s32 3, %v59_v23 }
  0x1c   :  { %s410_s2 = sshll.u32 %s541_s0, 4  ;;  %s411_s2 = int_to_ptr.vmem [resolvable:$true] %s410_s2 }
  0x1d   :  { %v604_v29 = vrot.slane %v56_v26, %v60_v24  ;;  %v606_v30 = vrot.slane %v56_v26, %v68_v25  ;;  %v608_v31 = vrot.slane %v56_v26, %v64_v27  ;;  %v610_v32 = vrot.slane %v56_v26, %v72_v28  ;;  %s511_s10 = scalar_lea.vmem %s411_s2, 5120  ;;  %p516_p9 = scmp.lt.s32.totalorder %s411_s2, %s411_s2 }
  0x1e   :  { %204 = vmatpush1.bf16.msra.mxu0 %v476_v11  ;;  %287 = vmatpush1.bf16.msra.mxu1 %v477_v12  ;;  %p512_p8 = scmp.ne.s32.totalorder %s411_s2, %s511_s10  ;;  %p517_p10 = scmp.lt.s32.totalorder %s511_s10, %s511_s10 }
  0x1f   :  { %205 = vmatprep.subr.bf16.mxu0 %v478_v13  ;;  %288 = vmatprep.subr.bf16.mxu1 %v480_v14 }
  0x20   :  { %p518_p11 = por %p517_p10, %p516_p9 }
  0x22   :  { %206 = vmatpush1.bf16.msra.mxu0 %v482_v15  ;;  %289 = vmatpush1.bf16.msra.mxu1 %v483_v16  ;;  %p519_p12 = pnand %p518_p11, %p512_p8 }
  0x25   :  { %443 = vmatmul.mubr.msk.bf16.vlgmr.msra.gmra.mrb[0].mxu0 %vm183_vm0, %v484_v17  ;;  %448 = vmatmul.mubr.msk.bf16.vlgmr.msra.gmra.mrb[0].mxu1 %vm183_vm0, %v484_v17 }
  0x26   :  { %241 = vmatprep.mubr.bf16.mxu0 %v540_v0  ;;  %324 = vmatprep.mubr.bf16.mxu1 %v540_v0 }
  0x2d   :  { %444 = vmatmul.mubr.msk.bf16.gmra.mrb[4].mxu0 %vm183_vm0, %v485_v18  ;;  %449 = vmatmul.mubr.msk.bf16.gmra.mrb[4].mxu1 %vm183_vm0, %v485_v18 }
  0x2e   :  { %251 = vmatprep.mubr.bf16.mxu0 %v540_v0  ;;  %334 = vmatprep.mubr.bf16.mxu1 %v540_v0 }
  0x35   :  { %445 = vmatmul.mubr.msk.bf16.gmra.mrb[8].mxu0 %vm183_vm0, %v486_v19  ;;  %450 = vmatmul.mubr.msk.bf16.gmra.mrb[8].mxu1 %vm183_vm0, %v486_v19 }
  0x36   :  { %261 = vmatprep.mubr.bf16.mxu0 %v540_v0  ;;  %344 = vmatprep.mubr.bf16.mxu1 %v540_v0 }
  0x3d   :  { %446 = vmatmul.mubr.msk.bf16.gmra.mrb[12].mxu0 %vm183_vm0, %v487_v20  ;;  %451 = vmatmul.mubr.msk.bf16.gmra.mrb[12].mxu1 %vm183_vm0, %v487_v20 }
  0x3e   :  { %271 = vmatprep.mubr.bf16.mxu0 %v540_v0  ;;  %354 = vmatprep.mubr.bf16.mxu1 %v540_v0 }
  0x45   :  { %447 = vmatmul.mubr.msk.bf16.gmra.mrb[16].mxu0 %vm183_vm0, %v488_v21  ;;  %452 = vmatmul.mubr.msk.bf16.gmra.mrb[16].mxu1 %vm183_vm0, %v488_v21 }
  0xf8   :  { %v233_v33 = vpop.f32.mrb[0].mxu0  ;;  %v316_v34 = vpop.f32.mrb[0].mxu1 }
  0xf9   :  { %v234_v35 = vadd.f32 %v233_v33, %v604_v29  ;;  %v317_v36 = vadd.f32 %v316_v34, %v606_v30  ;;  %v235_v37 = vpop.f32.mrb[1].mxu0  ;;  %v318_v38 = vpop.f32.mrb[1].mxu1 }
  0xfa   :  { %v236_v39 = vadd.f32 %v235_v37, %v608_v31  ;;  %v319_v40 = vadd.f32 %v318_v38, %v610_v32  ;;  %v237_v41 = vpop.f32.mrb[2].mxu0  ;;  %v320_v42 = vpop.f32.mrb[2].mxu1 }
  0xfb   :  { %365 = vst [vmem:[#allocation5] sm:$0xff] %v234_v35  ;;  %367 = vst [vmem:[#allocation5 + $0x10] sm:$0xff] %v317_v36  ;;  %v238_v43 = vadd.f32 %v237_v41, %v604_v29  ;;  %v321_v44 = vadd.f32 %v320_v42, %v606_v30  ;;  %v239_v45 = vpop.f32.mrb[3].mxu0  ;;  %v322_v46 = vpop.f32.mrb[3].mxu1 }
  0xfc   :  { %366 = vst [vmem:[#allocation5 + $0x8] sm:$0xff] %v236_v39  ;;  %368 = vst [vmem:[#allocation5 + $0x18] sm:$0xff] %v319_v40  ;;  %v240_v47 = vadd.f32 %v239_v45, %v608_v31  ;;  %v323_v48 = vadd.f32 %v322_v46, %v610_v32 }
  0xfd   :  { %369 = vst [vmem:[#allocation5 + $0x20] sm:$0xff] %v238_v43  ;;  %371 = vst [vmem:[#allocation5 + $0x30] sm:$0xff] %v321_v44 }
  0xfe   :  { %370 = vst [vmem:[#allocation5 + $0x28] sm:$0xff] %v240_v47  ;;  %372 = vst [vmem:[#allocation5 + $0x38] sm:$0xff] %v323_v48 }
 0x100   :  { %v243_v49 = vpop.f32.mrb[4].mxu0  ;;  %v326_v50 = vpop.f32.mrb[4].mxu1 }
 0x101   :  { %v244_v51 = vadd.f32 %v243_v49, %v604_v29  ;;  %v327_v52 = vadd.f32 %v326_v50, %v606_v30  ;;  %v245_v53 = vpop.f32.mrb[5].mxu0  ;;  %v328_v54 = vpop.f32.mrb[5].mxu1 }
 0x102   :  { %v246_v55 = vadd.f32 %v245_v53, %v608_v31  ;;  %v329_v56 = vadd.f32 %v328_v54, %v610_v32  ;;  %v247_v57 = vpop.f32.mrb[6].mxu0  ;;  %v330_v58 = vpop.f32.mrb[6].mxu1 }
 0x103   :  { %373 = vst [vmem:[#allocation5 + $0x40] sm:$0xff] %v244_v51  ;;  %375 = vst [vmem:[#allocation5 + $0x50] sm:$0xff] %v327_v52  ;;  %v248_v59 = vadd.f32 %v247_v57, %v604_v29  ;;  %v331_v60 = vadd.f32 %v330_v58, %v606_v30  ;;  %v249_v61 = vpop.f32.mrb[7].mxu0  ;;  %v332_v62 = vpop.f32.mrb[7].mxu1 }
 0x104   :  { %374 = vst [vmem:[#allocation5 + $0x48] sm:$0xff] %v246_v55  ;;  %376 = vst [vmem:[#allocation5 + $0x58] sm:$0xff] %v329_v56  ;;  %v250_v63 = vadd.f32 %v249_v61, %v608_v31  ;;  %v333_v0 = vadd.f32 %v332_v62, %v610_v32 }
 0x105   :  { %377 = vst [vmem:[#allocation5 + $0x60] sm:$0xff] %v248_v59  ;;  %379 = vst [vmem:[#allocation5 + $0x70] sm:$0xff] %v331_v60 }
 0x106   :  { %378 = vst [vmem:[#allocation5 + $0x68] sm:$0xff] %v250_v63  ;;  %380 = vst [vmem:[#allocation5 + $0x78] sm:$0xff] %v333_v0 }
 0x108   :  { %v253_v1 = vpop.f32.mrb[8].mxu0  ;;  %v336_v2 = vpop.f32.mrb[8].mxu1 }
 0x109   :  { %v254_v3 = vadd.f32 %v253_v1, %v604_v29  ;;  %v337_v4 = vadd.f32 %v336_v2, %v606_v30  ;;  %v255_v5 = vpop.f32.mrb[9].mxu0  ;;  %v338_v6 = vpop.f32.mrb[9].mxu1 }
 0x10a   :  { %v256_v7 = vadd.f32 %v255_v5, %v608_v31  ;;  %v339_v8 = vadd.f32 %v338_v6, %v610_v32  ;;  %v257_v9 = vpop.f32.mrb[10].mxu0  ;;  %v340_v10 = vpop.f32.mrb[10].mxu1 }
 0x10b   :  { %381 = vst [vmem:[#allocation5 + $0x80] sm:$0xff] %v254_v3  ;;  %383 = vst [vmem:[#allocation5 + $0x90] sm:$0xff] %v337_v4  ;;  %v258_v11 = vadd.f32 %v257_v9, %v604_v29  ;;  %v341_v12 = vadd.f32 %v340_v10, %v606_v30  ;;  %v259_v13 = vpop.f32.mrb[11].mxu0  ;;  %v342_v14 = vpop.f32.mrb[11].mxu1 }
 0x10c   :  { %382 = vst [vmem:[#allocation5 + $0x88] sm:$0xff] %v256_v7  ;;  %384 = vst [vmem:[#allocation5 + $0x98] sm:$0xff] %v339_v8  ;;  %v260_v15 = vadd.f32 %v259_v13, %v608_v31  ;;  %v343_v16 = vadd.f32 %v342_v14, %v610_v32 }
 0x10d   :  { %385 = vst [vmem:[#allocation5 + $0xa0] sm:$0xff] %v258_v11  ;;  %387 = vst [vmem:[#allocation5 + $0xb0] sm:$0xff] %v341_v12 }
 0x10e   :  { %386 = vst [vmem:[#allocation5 + $0xa8] sm:$0xff] %v260_v15  ;;  %388 = vst [vmem:[#allocation5 + $0xb8] sm:$0xff] %v343_v16 }
 0x110   :  { %v263_v17 = vpop.f32.mrb[12].mxu0  ;;  %v346_v18 = vpop.f32.mrb[12].mxu1 }
 0x111   :  { %v264_v19 = vadd.f32 %v263_v17, %v604_v29  ;;  %v347_v20 = vadd.f32 %v346_v18, %v606_v30  ;;  %v265_v21 = vpop.f32.mrb[13].mxu0  ;;  %v348_v22 = vpop.f32.mrb[13].mxu1 }
 0x112   :  { %v266_v23 = vadd.f32 %v265_v21, %v608_v31  ;;  %v349_v24 = vadd.f32 %v348_v22, %v610_v32  ;;  %v267_v25 = vpop.f32.mrb[14].mxu0  ;;  %v350_v26 = vpop.f32.mrb[14].mxu1 }
 0x113   :  { %389 = vst [vmem:[#allocation5 + $0xc0] sm:$0xff] %v264_v19  ;;  %391 = vst [vmem:[#allocation5 + $0xd0] sm:$0xff] %v347_v20  ;;  %v268_v27 = vadd.f32 %v267_v25, %v604_v29  ;;  %v351_v28 = vadd.f32 %v350_v26, %v606_v30  ;;  %v269_v33 = vpop.f32.mrb[15].mxu0  ;;  %v352_v34 = vpop.f32.mrb[15].mxu1 }
 0x114   :  { %390 = vst [vmem:[#allocation5 + $0xc8] sm:$0xff] %v266_v23  ;;  %392 = vst [vmem:[#allocation5 + $0xd8] sm:$0xff] %v349_v24  ;;  %v270_v35 = vadd.f32 %v269_v33, %v608_v31  ;;  %v353_v36 = vadd.f32 %v352_v34, %v610_v32 }
 0x115   :  { %393 = vst [vmem:[#allocation5 + $0xe0] sm:$0xff] %v268_v27  ;;  %395 = vst [vmem:[#allocation5 + $0xf0] sm:$0xff] %v351_v28 }
 0x116   :  { %394 = vst [vmem:[#allocation5 + $0xe8] sm:$0xff] %v270_v35  ;;  %396 = vst [vmem:[#allocation5 + $0xf8] sm:$0xff] %v353_v36 }
 0x118   :  { %v273_v37 = vpop.f32.mrb[16].mxu0  ;;  %v356_v38 = vpop.f32.mrb[16].mxu1 }
 0x119   :  { %v274_v39 = vadd.f32 %v273_v37, %v604_v29  ;;  %v357_v40 = vadd.f32 %v356_v38, %v606_v30  ;;  %v275_v41 = vpop.f32.mrb[17].mxu0  ;;  %v358_v42 = vpop.f32.mrb[17].mxu1 }
 0x11a   :  { %v276_v43 = vadd.f32 %v275_v41, %v608_v31  ;;  %v359_v44 = vadd.f32 %v358_v42, %v610_v32  ;;  %v277_v45 = vpop.f32.mrb[18].mxu0  ;;  %v360_v46 = vpop.f32.mrb[18].mxu1 }
 0x11b   :  { %397 = vst [vmem:[#allocation5 + $0x100] sm:$0xff] %v274_v39  ;;  %399 = vst [vmem:[#allocation5 + $0x110] sm:$0xff] %v357_v40  ;;  %v278_v47 = vadd.f32 %v277_v45, %v604_v29  ;;  %v361_v48 = vadd.f32 %v360_v46, %v606_v30  ;;  %v279_v49 = vpop.f32.mrb[19].mxu0  ;;  %v362_v50 = vpop.f32.mrb[19].mxu1 }
 0x11c   :  { %398 = vst [vmem:[#allocation5 + $0x108] sm:$0xff] %v276_v43  ;;  %400 = vst [vmem:[#allocation5 + $0x118] sm:$0xff] %v359_v44  ;;  %v280_v51 = vadd.f32 %v279_v49, %v608_v31  ;;  %v363_v52 = vadd.f32 %v362_v50, %v610_v32 }
 0x11d   :  { %401 = vst [vmem:[#allocation5 + $0x120] sm:$0xff] %v278_v47  ;;  %403 = vst [vmem:[#allocation5 + $0x130] sm:$0xff] %v361_v48 }
 0x11e   :  { %402 = vst [vmem:[#allocation5 + $0x128] sm:$0xff] %v280_v51  ;;  %404 = vst [vmem:[#allocation5 + $0x138] sm:$0xff] %v363_v52 }
 0x11f   :  { %522 = shalt.err (!%p519_p12)
}
 0x120   :  { %s523_s13 = scalar_lea.hbm %s667_s3, 5120 }
 0x121   :  { %p524_p13 = scmp.ne.s32.totalorder %s667_s3, %s523_s13  ;;  %p527_p0 = scmp.lt.u32.totalorder %s523_s13, %s667_s3 }
 0x123   :  { %p529_p1 = pnand %p527_p0, %p524_p13 }
 0x125   :  { %532 = shalt.err (!%p529_p1)
}
 0x126   :  { %s542_s18 = smov 512   ;;  %s543_s19 = smov 32  }
 0x127   :  { %416 = dma.vmem_to_hbm [thread:$0]  %s411_s2, 5120, %s667_s3, [#allocation4], %s542_s18, %s542_s18, %s543_s19  }
 0x128   :  { %535 = dma.done.wait [#allocation4], 5120  }
 0x129   :  { %536 = vsyncadd [#allocation4], 4294962176 }
 0x12a   :  { %420 = vsyncpa [#allocation3], 1 }
 0x12b   :  { %421 = vsyncpa [#allocation4], 1 }

</bundles_post_ra>
